<compile_context>
chip_gen: v7x
topology: tpu7x:2x2x1
jax: 0.10.0
libtpu: 0.0.40
codegen_flags: <defaults>
</compile_context>

<pallas_src>
import jax
import jax.numpy as jnp
from jax.experimental import pallas as pl
from jax.experimental.pallas import tpu as pltpu


def _matvec_bias_kernel(r_ref, w_ref, b_ref, y_ref):
    """y_block = r_block @ w + b   (the folded DeepNetLinear forward)."""
    # r_ref: (block_rows, L)    VMEM   (L = 128 packed, or n_inputs unpacked)
    # w_ref: (L, pack)          VMEM   (resident across the whole grid)
    # b_ref: (1,)          f32  SMEM   (scalar effective bias)
    # y_ref: (block_rows, pack) f32 VMEM
    y_ref[...] = (
        jnp.dot(r_ref[...], w_ref[...], preferred_element_type=jnp.float32)
        + b_ref[0]
    )


def _run_matvec(r2d, w_in, b_eff, *, block_bytes, vmem_limit_bytes):
    """Launch the tiled streaming mat-vec kernel on a 2-D (rows, lane) array."""
    n_rows, lane = r2d.shape
    pack = w_in.shape[1]
    in_itemsize = jnp.dtype(r2d.dtype).itemsize

    # --- block_rows from the *streamed* HBM bytes of r per grid step ---
    streamed_row_bytes = lane * in_itemsize
    rows_stream = max(8, block_bytes // streamed_row_bytes)

    # --- separately cap by the real VMEM footprint: double-buffered input tile
    #     (lane-padded to 128) + double-buffered output tile (last dim pack<=4
    #     pads to 128 lanes, f32) ---
    padded_lane = ((lane + 127) // 128) * 128
    vmem_row_bytes = 2 * padded_lane * in_itemsize + 2 * 128 * 4
    vmem_block_budget = max(vmem_limit_bytes - 8 * 1024 * 1024, 4 * 1024 * 1024)
    rows_vmem = max(8, vmem_block_budget // vmem_row_bytes)

    rows_budget = min(rows_stream, rows_vmem)
    if n_rows <= rows_budget:
        block_rows = n_rows                       # single block == full extent (legal)
    else:
        block_rows = max(8, (rows_budget // 8) * 8)   # keep sublane (8) alignment
    num_blocks = pl.cdiv(n_rows, block_rows)      # ragged last block handled by Pallas

    return pl.pallas_call(
        _matvec_bias_kernel,
        out_shape=jax.ShapeDtypeStruct((n_rows, pack), jnp.float32),
        grid=(num_blocks,),
        in_specs=[
            pl.BlockSpec((block_rows, lane), lambda i: (i, 0)),    # streamed r tiles
            pl.BlockSpec((lane, pack), lambda i: (0, 0)),          # resident weight
            pl.BlockSpec(memory_space=pltpu.MemorySpace.SMEM),     # scalar bias
        ],
        out_specs=pl.BlockSpec((block_rows, pack), lambda i: (i, 0)),
        compiler_params=pltpu.CompilerParams(
            # TODO(synk): on v7x, pltpu.CORE_PARALLEL (or an explicit core axis)
            # would shard this axis over the two TensorCores; "parallel" is kept
            # because it compiles and runs safely on every chip generation.
            dimension_semantics=("parallel",),
            vmem_limit_bytes=vmem_limit_bytes,
        ),
    )(r2d, w_in, b_eff)


def deepnet_linear_forward(r, w1, b1, w2, b2, *,
                           block_bytes=8 * 1024 * 1024,
                           vmem_limit_bytes=48 * 1024 * 1024,
                           stream_bf16=False):
    """Forward pass of DeepNetLinear: y = (r @ w1 + b1) @ w2 + b2.

    Args:
      r:  (n_stimuli, n_inputs) or (n_inputs,) float32 neural responses.
      w1: (n_inputs, n_hidden)  -- in_layer.weight.T
      b1: (n_hidden,)           -- in_layer.bias
      w2: (n_hidden, 1)         -- out_layer.weight.T
      b2: (1,)                  -- out_layer.bias
      block_bytes: target *streamed HBM bytes of r* per grid step.
      vmem_limit_bytes: Mosaic scoped-VMEM limit (48 MiB is safe on v7x/v6e/v5e).
      stream_bf16: stream r (and the folded weight) as bf16 for ~2x less HBM
        traffic; accumulation stays f32.  Breaks exact f32 parity (default off).

    Returns:
      (n_stimuli, 1) if r was 2D, else (1,)  -- matches the PyTorch semantics.
    """
    r = jnp.asarray(r, jnp.float32)
    was_1d = r.ndim == 1
    if was_1d:
        r = r[None, :]
    B, n_in = r.shape

    # ---- Fold the two linear layers (exact in exact arithmetic; reorders the
    #      f32 reduction vs PyTorch's two-step forward, matches to ~1e-5). ----
    w1 = jnp.asarray(w1, jnp.float32)
    b1 = jnp.asarray(b1, jnp.float32)
    w2 = jnp.asarray(w2, jnp.float32)
    b2 = jnp.asarray(b2, jnp.float32)
    w_eff = w1 @ w2                              # (n_in, 1)
    b_eff = (b1 @ w2 + b2).reshape(1)            # (1,) scalar effective bias

    stream_dtype = jnp.bfloat16 if stream_bf16 else jnp.float32
    r_stream = r.astype(stream_dtype)

    # ---- Pack stimuli into lane-dense 128-wide rows when it is free. ----
    pack = 128 // n_in if (n_in <= 128 and 128 % n_in == 0) else 1
    if pack > 1 and B < pack:
        pack = 1                                  # too few rows to pack at all

    if pack > 1:
        # Packed prefix through the kernel; <= pack-1 leftover rows go through a
        # tiny pure-JAX epilogue instead of dropping packing for the whole batch.
        b_main = (B // pack) * pack
        lane = pack * n_in                        # == 128
        n_rows = b_main // pack
        r2d = r_stream[:b_main].reshape(n_rows, lane)   # row-major: no data movement
        # Block-diagonal weight: column j selects the j-th packed stimulus.
        w_in = jnp.kron(jnp.eye(pack, dtype=jnp.float32), w_eff)   # (128, pack)
    else:
        b_main = B
        lane = n_in
        n_rows = B
        r2d = r_stream
        w_in = w_eff                                               # (n_in, 1)

    w_in = w_in.astype(stream_dtype)

    out2d = _run_matvec(r2d, w_in, b_eff,
                        block_bytes=block_bytes,
                        vmem_limit_bytes=vmem_limit_bytes)
    y = out2d.reshape(b_main, 1)                  # (n_rows, pack) -> (b_main, 1)

    if b_main < B:                                # ragged tail: < pack rows, pure JAX
        y_tail = r[b_main:] @ w_eff + b_eff
        y = jnp.concatenate([y, y_tail], axis=0)

    if was_1d:
        y = y.reshape(1)
    return y


def init_params(key, n_inputs, n_hidden):
    """Deterministic init mimicking torch.nn.Linear's U(-1/sqrt(fan_in), 1/sqrt(fan_in))."""
    k1, k2, k3, k4 = jax.random.split(key, 4)
    bound1 = 1.0 / jnp.sqrt(n_inputs)
    bound2 = 1.0 / jnp.sqrt(n_hidden)
    w1 = jax.random.uniform(k1, (n_inputs, n_hidden), jnp.float32, -bound1, bound1)
    b1 = jax.random.uniform(k2, (n_hidden,), jnp.float32, -bound1, bound1)
    w2 = jax.random.uniform(k3, (n_hidden, 1), jnp.float32, -bound2, bound2)
    b2 = jax.random.uniform(k4, (1,), jnp.float32, -bound2, bound2)
    return w1, b1, w2, b2


if __name__ == "__main__":
    n_inputs = 32     # number of neurons whose responses we decode
    n_hidden = 16     # hidden-layer width
    n_stimuli = 8     # small demo batch

    key = jax.random.PRNGKey(0)
    k_params, k_r, k_big = jax.random.split(key, 3)
    w1, b1, w2, b2 = init_params(k_params, n_inputs, n_hidden)

    # --- small demo batch (single block, packed lane-dense layout) ---
    r = jax.random.normal(k_r, (n_stimuli, n_inputs), jnp.float32)
    y = jax.block_until_ready(deepnet_linear_forward(r, w1, b1, w2, b2))
    y_ref = (r @ w1 + b1[None, :]) @ w2 + b2[None, :]
    assert y.shape == (n_stimuli, 1)
    assert jnp.allclose(y, y_ref, atol=1e-5, rtol=1e-5)

    # --- 1D (single response vector) path: unpacked fallback ---
    y1 = jax.block_until_ready(deepnet_linear_forward(r[0], w1, b1, w2, b2))
    assert y1.shape == (1,)
    assert jnp.allclose(y1, y_ref[0], atol=1e-5, rtol=1e-5)

    # --- larger batch, B % pack != 0, with a tiny block budget: exercises the
    #     multi-block grid, the ragged final tile, the resident-weight revisit
    #     and the pure-JAX packed-tail epilogue ---
    r_big = jax.random.normal(k_big, (1003, n_inputs), jnp.float32)
    y_big = jax.block_until_ready(
        deepnet_linear_forward(r_big, w1, b1, w2, b2, block_bytes=4096))
    y_big_ref = (r_big @ w1 + b1[None, :]) @ w2 + b2[None, :]
    assert y_big.shape == (1003, 1)
    assert jnp.allclose(y_big, y_big_ref, atol=1e-5, rtol=1e-5)

    # --- optional bf16 streaming path (halved HBM bytes; relaxed tolerance) ---
    y_bf16 = jax.block_until_ready(
        deepnet_linear_forward(r_big, w1, b1, w2, b2, stream_bf16=True))
    assert y_bf16.shape == (1003, 1)
    assert jnp.allclose(y_bf16, y_big_ref, atol=1e-1, rtol=1e-1)

    print("KERNEL_OK")
</pallas_src>

<mosaic_0001>
module attributes {stable_mosaic.version = 11 : i64} {
  func.func @_matvec_bias_kernel(%arg0: i32, %arg1: memref<2x128xf32, #tpu.memory_space<vmem>>, %arg2: memref<128x4xf32, #tpu.memory_space<vmem>>, %arg3: memref<1xf32, #tpu.memory_space<smem>>, %arg4: memref<2x4xf32, #tpu.memory_space<vmem>>) attributes {dimension_semantics = [#tpu.dimension_semantics<parallel>], iteration_bounds = array<i64: 1>, scalar_prefetch = 0 : i64, scratch_operands = 0 : i64, tpu.core_type = #tpu.core_type<tc>, window_params = [{transform_indices = @transform_0, window_bounds = array<i64: 2, 128>}, {pipeline_mode = #tpu.pipeline_mode<synchronous>, transform_indices = @transform_1, window_bounds = array<i64: 128, 4>}, {transform_indices = @transform_2, window_bounds = array<i64: 1>}, {transform_indices = @transform_3, window_bounds = array<i64: 2, 4>}]} {
    %c0 = arith.constant 0 : index
    %c0_0 = arith.constant 0 : index
    %0 = vector.load %arg1[%c0, %c0_0] : memref<2x128xf32, #tpu.memory_space<vmem>>, vector<2x128xf32>
    %c0_1 = arith.constant 0 : index
    %c0_2 = arith.constant 0 : index
    %1 = vector.load %arg2[%c0_1, %c0_2] : memref<128x4xf32, #tpu.memory_space<vmem>>, vector<128x4xf32>
    %cst = arith.constant dense<0.000000e+00> : vector<2x4xf32>
    %2 = tpu.matmul %0, %1, %cst {dimension_numbers = #tpu.dot_dimension_numbers<[1], [0], [0], [1], [0, 0, 1, 1], [], []>} : vector<2x128xf32>, vector<128x4xf32>, vector<2x4xf32> -> vector<2x4xf32>
    %c0_3 = arith.constant 0 : index
    %3 = memref.load %arg3[%c0_3] : memref<1xf32, #tpu.memory_space<smem>>
    %4 = vector.broadcast %3 : f32 to vector<2x4xf32>
    %5 = arith.addf %2, %4 : vector<2x4xf32>
    %c0_4 = arith.constant 0 : index
    %c0_5 = arith.constant 0 : index
    %6 = vector.load %arg4[%c0_4, %c0_5] : memref<2x4xf32, #tpu.memory_space<vmem>>, vector<2x4xf32>
    tpu.vector_store %arg4[%c0_4, %c0_5], %5 {strides = array<i32>} : memref<2x4xf32, #tpu.memory_space<vmem>>, vector<2x4xf32>,
    return
  }
  func.func @transform_0(%arg0: i32) -> (i32, i32) {
    %c0_i32 = arith.constant 0 : i32
    %c0_i32_0 = arith.constant 0 : i32
    return %arg0, %c0_i32 : i32, i32
  }
  func.func @transform_1(%arg0: i32) -> (i32, i32) {
    %c0_i32 = arith.constant 0 : i32
    %c0_i32_0 = arith.constant 0 : i32
    %c0_i32_1 = arith.constant 0 : i32
    return %c0_i32, %c0_i32_0 : i32, i32
  }
  func.func @transform_2(%arg0: i32) -> i32 {
    %c0_i32 = arith.constant 0 : i32
    %c0_i32_0 = arith.constant 0 : i32
    return %c0_i32 : i32
  }
  func.func @transform_3(%arg0: i32) -> (i32, i32) {
    %c0_i32 = arith.constant 0 : i32
    %c0_i32_0 = arith.constant 0 : i32
    return %arg0, %c0_i32 : i32, i32
  }
}

</mosaic_0001>

<bundles_post_ra>
// kernel: tpu_custom_call.1
= control target key start
LH: loop header
LB: loop body
LE: loop exit
PB: predicated region body
PF: predicated region fallthrough
CT: control target
= control target key end

     0   :  { %v225_v3 = vmov 0.0|0.0   ;;  %vm226_vm0 = vmmov 0   ;;  %v227_v6 = vmov 0.0   ;;  %s315_s0 = inlined_call_operand.vmem [shape: f32[2,128], index: 0, kind: input, shape index: {}]   ;;  %s316_s1 = inlined_call_operand.vmem [shape: f32[128,4], index: 1, kind: input, shape index: {}]   ;;  %s317_s2 = inlined_call_operand.<no memory space> [shape: f32[1], index: 2, kind: input, shape index: {}]   ;;  %s318_s3 = inlined_call_operand.hbm [shape: f32[2,4], index: 3, kind: output, shape index: {}]  }
   0x1   :  { %v17_v0 = vld [vmem:[%s316_s1] sm:$0xff]  ;;  %v18_v1 = vld [vmem:[%s316_s1 + $0x8] sm:$0xff]  ;;  %v19_v2 = vld [vmem:[%s316_s1 + $0x10] sm:$0xff]  ;;  %173 = vmatprep.subr.bf16.mxu0 %v225_v3  ;;  %170 = vmatprep.mubr.msk.f32.mxu0 %vm226_vm0, %v227_v6 }
   0x2   :  { %v174_v4 = vpack.c.bf16 %v18_v1, %v17_v0  ;;  %v20_v5 = vld [vmem:[%s316_s1 + $0x18] sm:$0xff]  ;;  %v21_v8 = vld [vmem:[%s316_s1 + $0x20] sm:$0xff]  ;;  %v22_v9 = vld [vmem:[%s316_s1 + $0x28] sm:$0xff] }
   0x3   :  { %v177_v7 = vpack.c.bf16 %v20_v5, %v19_v2 }
   0x4   :  { %175 = vmatpush3.bf16.msra.mxu0 %v174_v4 }
   0x5   :  { %176 = vmatprep.subr.bf16.mxu0 %v225_v3 }
   0x6   :  { %9 = vsyncpa [#allocation4], 0  ;;  %v180_v10 = vpack.c.bf16 %v22_v9, %v21_v8  ;;  %v23_v11 = vld [vmem:[%s316_s1 + $0x30] sm:$0xff]  ;;  %v24_v12 = vld [vmem:[%s316_s1 + $0x38] sm:$0xff]  ;;  %v34_v27 = vstv %s317_s2  ;;  %s228_s21 = smov [#allocation3]   ;;  %vm105_vm1 = vcmask 25600  }
   0x7   :  { %v183_v13 = vpack.c.bf16 %v24_v12, %v23_v11  ;;  %v25_v14 = vld [vmem:[%s316_s1 + $0x40] sm:$0xff]  ;;  %v26_v15 = vld [vmem:[%s316_s1 + $0x48] sm:$0xff]  ;;  %v27_v17 = vld [vmem:[%s316_s1 + $0x50] sm:$0xff]  ;;  %s113_s22 = sshll.u32 %s228_s21, 4  ;;  %s114_s22 = int_to_ptr.vmem [resolvable:$true] %s113_s22 }
   0x8   :  { %178 = vmatpush3.bf16.msra.mxu0 %v177_v7  ;;  %v186_v16 = vpack.c.bf16 %v26_v15, %v25_v14  ;;  %v28_v18 = vld [vmem:[%s316_s1 + $0x58] sm:$0xff]  ;;  %v29_v20 = vld [vmem:[%s316_s1 + $0x60] sm:$0xff]  ;;  %v30_v21 = vld [vmem:[%s316_s1 + $0x68] sm:$0xff]  ;;  %p206_p1 = scmp.lt.s32.totalorder %s114_s22, %s114_s22 }
   0x9   :  { %179 = vmatprep.subr.bf16.mxu0 %v225_v3  ;;  %v189_v19 = vpack.c.bf16 %v28_v18, %v27_v17  ;;  %v192_v22 = vpack.c.bf16 %v30_v21, %v29_v20  ;;  %v31_v23 = vld [vmem:[%s316_s1 + $0x70] sm:$0xff]  ;;  %v32_v24 = vld [vmem:[%s316_s1 + $0x78] sm:$0xff]  ;;  %v16_v26 = vld [vmem:[%s315_s0] sm:$0x3]  ;;  %s201_s1 = scalar_lea.vmem %s114_s22, 32 }
   0xa   :  { %v195_v25 = vpack.c.bf16 %v32_v24, %v31_v23  ;;  %p202_p0 = scmp.ne.s32.totalorder %s114_s22, %s201_s1  ;;  %p207_p2 = scmp.lt.s32.totalorder %s201_s1, %s201_s1 }
   0xc   :  { %181 = vmatpush3.bf16.msra.mxu0 %v180_v10  ;;  %p208_p3 = por %p207_p2, %p206_p1 }
   0xd   :  { %182 = vmatprep.subr.bf16.mxu0 %v225_v3 }
   0xe   :  { %p209_p4 = pnand %p208_p3, %p202_p0 }
  0x10   :  { %184 = vmatpush3.bf16.msra.mxu0 %v183_v13 }
  0x11   :  { %185 = vmatprep.subr.bf16.mxu0 %v225_v3 }
  0x14   :  { %187 = vmatpush3.bf16.msra.mxu0 %v186_v16 }
  0x15   :  { %188 = vmatprep.subr.bf16.mxu0 %v225_v3 }
  0x18   :  { %190 = vmatpush3.bf16.msra.mxu0 %v189_v19 }
  0x19   :  { %191 = vmatprep.subr.bf16.mxu0 %v225_v3 }
  0x1c   :  { %193 = vmatpush3.bf16.msra.mxu0 %v192_v22 }
  0x1d   :  { %194 = vmatprep.subr.bf16.mxu0 %v225_v3 }
  0x20   :  { %196 = vmatpush3.bf16.msra.mxu0 %v195_v25 }
  0x23   :  { %171 = vmatmul.mubr.f32.vlgmr.msra.gmra.mrb[0].mxu0 %v16_v26 }
  0xf6   :  { %v101_v28 = vpop.f32.mrb[0].mxu0 }
  0xf7   :  { %v102_v29 = vadd.f32 %v101_v28, %v34_v27  ;;  %v172_v30 = vpop.f32.mrb[1].mxu0 }
  0xf9   :  { %106 = vst.msk [vmem:[#allocation3] sm:$0x3] %vm105_vm1, %v102_v29 }
  0xfa   :  { %212 = shalt.err (!%p209_p4)
}
  0xfb   :  { %s213_s24 = scalar_lea.hbm %s318_s3, 32 }
  0xfc   :  { %p214_p5 = scmp.ne.s32.totalorder %s318_s3, %s213_s24  ;;  %p217_p6 = scmp.lt.u32.totalorder %s213_s24, %s318_s3 }
  0xfe   :  { %p219_p7 = pnand %p217_p6, %p214_p5 }
 0x100   :  { %222 = shalt.err (!%p219_p7)
}
 0x101   :  { %116 = dma.vmem_to_hbm [thread:$0]  %s114_s22, 32, %s318_s3, [#allocation4]  }
 0x102   :  { %223 = dma.done.wait [#allocation4], 32  }
 0x103   :  { %224 = vsyncadd [#allocation4], 4294967264 }
 0x104   :  { %120 = vsyncpa [#allocation4], 1 }

</bundles_post_ra>
